<compile_context>
chip_gen: v7x
topology: tpu7x:2x2x1
jax: 0.10.0
libtpu: 0.0.40
codegen_flags: <defaults>
</compile_context>

<pallas_src>
import jax
import jax.numpy as jnp
from jax import lax
from jax.experimental import pallas as pl
from jax.experimental.pallas import tpu as pltpu

# ----------------------- configuration (small, consistent with the module) -----------------------
N = 2                 # batch
C = 4                 # channels (in == out)
H = W = 16            # input spatial size
TILE_H = TILE_W = 8   # RepMLP partition size (h, w args of the module)
S = 2                 # num_sharesets
REPARAM_CONV_K = (1, 3)
GP_REDUCE = 2         # globalperceptron_reduce
FFN_EXPAND = 4
C_INT = C // GP_REDUCE
HID = C * FFN_EXPAND
HP, WP = H // TILE_H, W // TILE_W
HWT = TILE_H * TILE_W
HWF = H * W
NC = N * C
BN_EPS = 1e-5

VMEM = pltpu.MemorySpace.VMEM


# ---------------------------------------- fused kernel ----------------------------------------
def fused_kernel(x_ref, rowc_ref, m_ref,
                 gpw1_ref, gpb1_ref, gpw2_ref, gpb2_ref,
                 fw1_ref, fb1_ref, fw2_ref, fb2_ref, o_ref):
    # x:    (N*C, H*W)      raw input rows (row = n*C + c), 256 lanes -> lane dense throughout
    # rowc: (N*C, 4)        per-row constants: [prebn1 scale, prebn1 shift, rep bias, shareset0 mask]
    # m:    (S, H*W, H*W)   folded (fc3 + fc3_bn + 1x1 conv-BN + 3x3 conv-BN) right-mul operator
    # gp*:  block-diagonal-over-batch global-perceptron weights (prebn1 folded in)
    # f*:   block-diagonal-over-batch FFN weights (prebn2 + post-conv BN folded in)
    # o:    (N*C, H*W)      final unit output (reshapes to NCHW for free)
    x = x_ref[...]
    rowc = rowc_ref[...]
    a1 = rowc[:, 0:1]            # prebn1 scale  per row
    b1 = rowc[:, 1:2]            # prebn1 shift  per row
    rep_bias = rowc[:, 2:3]      # folded fc3_bn / conv-BN additive bias per row
    is_s0 = rowc[:, 3:4]         # 1.0 if this row's channel belongs to shareset 0

    # ---- global perceptron: mean-pool first (mean commutes with the prebn1 affine, which is
    #      folded into gpw1/gpb1), then the tiny MLP + sigmoid gate, all kept in registers ----
    pooled = jnp.mean(x, axis=1, keepdims=True)                                     # (N*C, 1)
    h = jnp.dot(gpw1_ref[...], pooled, preferred_element_type=jnp.float32) + gpb1_ref[...]
    h = jnp.maximum(h, 0.0)                                                         # ReLU
    gate = jax.nn.sigmoid(
        jnp.dot(gpw2_ref[...], h, preferred_element_type=jnp.float32) + gpb2_ref[...])  # (N*C, 1)

    # ---- channel + local perceptron: one folded linear operator per shareset (fc3 matmul with
    #      the 1x1 and 3x3 depthwise convs reparameterized into the same matrix) ----
    x1 = x * a1 + b1                                                                # prebn1
    r0 = jnp.dot(x1, m_ref[0], preferred_element_type=jnp.float32)                  # (N*C, H*W)
    r1 = jnp.dot(x1, m_ref[1], preferred_element_type=jnp.float32)
    rep = jnp.where(is_s0 > 0.5, r0, r1) + rep_bias

    # ---- first residual + global-perceptron gating:  y = x + repmlp_block(prebn1(x)) ----
    y = x + rep * gate                                                              # (N*C, H*W)

    # ---- FFN block (prebn2 + FC-BN folded, block-diagonal over batch):  z = y + ffn(prebn2(y)) ----
    hf = jnp.dot(fw1_ref[...], y, preferred_element_type=jnp.float32) + fb1_ref[...]   # (N*HID, H*W)
    # TODO(synk): PyTorch nn.GELU() uses the exact erf form; tanh approximation used here.
    hf = jax.nn.gelu(hf, approximate=True)
    ffn = jnp.dot(fw2_ref[...], hf, preferred_element_type=jnp.float32) + fb2_ref[...]  # (N*C, H*W)
    o_ref[...] = y + ffn


# ---------------------------------------- host-side folding ----------------------------------------
def conv3_matrix(k3):
    # k3: (S, 3, 3) depthwise kernels -> (S, HWT, HWT) matrix M with M[s, out_pix, in_pix]
    # implementing a 3x3 conv with zero padding 1 on an (TILE_H, TILE_W) tile.
    rows = jnp.arange(HWT) // TILE_W
    cols = jnp.arange(HWT) % TILE_W
    m = jnp.zeros((S, HWT, HWT), jnp.float32)
    for di in range(3):
        for dj in range(3):
            ii = rows + di - 1
            jj = cols + dj - 1
            valid = ((ii >= 0) & (ii < TILE_H) & (jj >= 0) & (jj < TILE_W)).astype(jnp.float32)
            in_idx = jnp.clip(ii, 0, TILE_H - 1) * TILE_W + jnp.clip(jj, 0, TILE_W - 1)
            onehot = jax.nn.one_hot(in_idx, HWT, dtype=jnp.float32) * valid[:, None]
            m = m + k3[:, di, dj][:, None, None] * onehot[None, :, :]
    return m


def repmlp_unit_forward(x, p):
    # ---- per-shareset (in, out)-oriented tile operator: fc3(+BN) + 1x1 conv(+BN) + 3x3 conv(+BN) ----
    w3 = p['fc3_w'].reshape(S, HWT, HWT)                                   # [s, out, in]
    w_tile = jnp.transpose(w3, (0, 2, 1)) * p['fc3bn_s'][:, None, None]    # right-mul, BN scale folded
    w_tile = w_tile + (p['c1_s'] * p['conv1_w'])[:, None, None] * jnp.eye(HWT, dtype=jnp.float32)[None]
    conv3m = conv3_matrix(p['conv3_w'][:, 0])                              # [s, out, in]
    w_tile = w_tile + p['c3_s'][:, None, None] * jnp.transpose(conv3m, (0, 2, 1))
    bias_s = p['fc3bn_b'] + p['c1_b'] + p['c3_b']                          # (S,)

    # embed the per-tile operator into a full (H*W, H*W) operator on the flat spatial axis,
    # so the kernel never has to partition / un-partition (no transposes anywhere).
    pix = jnp.arange(HWF)
    pi, pj = pix // W, pix % W
    tile_id = (pi // TILE_H) * WP + (pj // TILE_W)
    intile = (pi % TILE_H) * TILE_W + (pj % TILE_W)
    same = tile_id[:, None] == tile_id[None, :]
    m_full = jnp.where(same[None], w_tile[:, intile[:, None], intile[None, :]], 0.0)   # (S, HWF, HWF)

    # per-row (row = n*C + c) constants
    ch_row = jnp.arange(NC) % C
    s_row = ch_row % S
    rowc = jnp.stack([p['bn1_s'][ch_row], p['bn1_b'][ch_row],
                      bias_s[s_row], (s_row == 0).astype(jnp.float32)], axis=1)        # (NC, 4)

    # global perceptron weights with prebn1 folded in, block-diagonal over batch
    eye_n = jnp.eye(N, dtype=jnp.float32)
    gpw1_eff = p['gp_fc1_w'] * p['bn1_s'][None, :]                         # (C_INT, C)
    gpb1_eff = p['gp_fc1_w'] @ p['bn1_b'] + p['gp_fc1_b']                  # (C_INT,)
    gpw1_blk = jnp.kron(eye_n, gpw1_eff)                                   # (N*C_INT, N*C)
    gpb1_col = jnp.tile(gpb1_eff, (N,))[:, None]
    gpw2_blk = jnp.kron(eye_n, p['gp_fc2_w'])                              # (N*C, N*C_INT)
    gpb2_col = jnp.tile(p['gp_fc2_b'], (N,))[:, None]

    # FFN weights with prebn2 and the post-FC BNs folded in, block-diagonal over batch
    w1_eff = p['f1_s'][:, None] * p['ffn1_w']                              # (HID, C)
    b1_eff = w1_eff @ p['bn2_b'] + p['f1_b']                               # (HID,)
    w1_eff = w1_eff * p['bn2_s'][None, :]
    fw1_blk = jnp.kron(eye_n, w1_eff)                                      # (N*HID, N*C)
    fb1_col = jnp.tile(b1_eff, (N,))[:, None]
    fw2_blk = jnp.kron(eye_n, p['f2_s'][:, None] * p['ffn2_w'])            # (N*C, N*HID)
    fb2_col = jnp.tile(p['f2_b'], (N,))[:, None]

    x2d = x.reshape(NC, HWF)                                               # free reshape (NCHW rows)
    z2d = pl.pallas_call(
        fused_kernel,
        out_shape=jax.ShapeDtypeStruct((NC, HWF), jnp.float32),
        in_specs=[pl.BlockSpec(memory_space=VMEM)] * 11,
        out_specs=pl.BlockSpec(memory_space=VMEM),
    )(x2d, rowc, m_full, gpw1_blk, gpb1_col, gpw2_blk, gpb2_col,
      fw1_blk, fb1_col, fw2_blk, fb2_col)
    return z2d.reshape(N, C, H, W)                                         # free reshape


# --------------------------------- parameters & reference ---------------------------------
def make_bn(key, n):
    k1, k2, k3, k4 = jax.random.split(key, 4)
    gamma = 1.0 + 0.1 * jax.random.normal(k1, (n,), jnp.float32)
    beta = 0.1 * jax.random.normal(k2, (n,), jnp.float32)
    mean = 0.1 * jax.random.normal(k3, (n,), jnp.float32)
    var = 1.0 + 0.3 * jax.random.uniform(k4, (n,), jnp.float32)
    scale = gamma * lax.rsqrt(var + BN_EPS)
    return scale, beta - mean * scale


def init_params(key):
    ks = jax.random.split(key, 16)
    p = {}
    p['bn1_s'], p['bn1_b'] = make_bn(ks[0], C)                      # prebn1
    p['bn2_s'], p['bn2_b'] = make_bn(ks[1], C)                      # prebn2
    p['gp_fc1_w'] = 0.2 * jax.random.normal(ks[2], (C_INT, C), jnp.float32)
    p['gp_fc1_b'] = 0.1 * jax.random.normal(ks[3], (C_INT,), jnp.float32)
    p['gp_fc2_w'] = 0.2 * jax.random.normal(ks[4], (C, C_INT), jnp.float32)
    p['gp_fc2_b'] = 0.1 * jax.random.normal(ks[5], (C,), jnp.float32)
    p['fc3_w'] = 0.05 * jax.random.normal(ks[6], (S * HWT, HWT), jnp.float32)
    p['fc3bn_s'], p['fc3bn_b'] = make_bn(ks[7], S)
    p['conv1_w'] = 0.3 * jax.random.normal(ks[8], (S,), jnp.float32)
    p['c1_s'], p['c1_b'] = make_bn(ks[9], S)
    p['conv3_w'] = 0.2 * jax.random.normal(ks[10], (S, 1, 3, 3), jnp.float32)
    p['c3_s'], p['c3_b'] = make_bn(ks[11], S)
    p['ffn1_w'] = 0.2 * jax.random.normal(ks[12], (HID, C), jnp.float32)
    p['f1_s'], p['f1_b'] = make_bn(ks[13], HID)
    p['ffn2_w'] = 0.2 * jax.random.normal(ks[14], (C, HID), jnp.float32)
    p['f2_s'], p['f2_b'] = make_bn(ks[15], C)
    return p


def reference_forward(x, p):
    def bn_c(v, s, b):
        return v * s[None, :, None, None] + b[None, :, None, None]

    x1 = bn_c(x, p['bn1_s'], p['bn1_b'])
    # global perceptron
    v = jnp.mean(x1, axis=(2, 3))
    h = jax.nn.relu(v @ p['gp_fc1_w'].T + p['gp_fc1_b'])
    gvec = jax.nn.sigmoid(h @ p['gp_fc2_w'].T + p['gp_fc2_b'])[:, :, None, None]
    # partition
    part = x1.reshape(N, C, HP, TILE_H, WP, TILE_W).transpose(0, 2, 4, 1, 3, 5)
    # channel perceptron
    fci = part.reshape(-1, S, HWT)
    w3 = p['fc3_w'].reshape(S, HWT, HWT)
    fc3 = jnp.einsum('psi,sji->psj', fci, w3)
    fc3 = fc3 * p['fc3bn_s'][None, :, None] + p['fc3bn_b'][None, :, None]
    fc3 = fc3.reshape(-1, S, TILE_H, TILE_W)
    # local perceptron
    ci = part.reshape(-1, S, TILE_H, TILE_W)
    c1 = ci * p['conv1_w'][None, :, None, None]
    c1 = c1 * p['c1_s'][None, :, None, None] + p['c1_b'][None, :, None, None]
    c3 = lax.conv_general_dilated(ci, p['conv3_w'], (1, 1), 'SAME',
                                  feature_group_count=S,
                                  dimension_numbers=('NCHW', 'OIHW', 'NCHW'))
    c3 = c3 * p['c3_s'][None, :, None, None] + p['c3_b'][None, :, None, None]
    fc3 = fc3 + c1 + c3
    out = fc3.reshape(N, HP, WP, C, TILE_H, TILE_W).transpose(0, 3, 1, 4, 2, 5)
    out = out.reshape(N, C, H, W) * gvec
    y = x + out
    # FFN
    y2 = bn_c(y, p['bn2_s'], p['bn2_b'])
    t = y2.transpose(0, 2, 3, 1).reshape(-1, C)
    hdd = t @ p['ffn1_w'].T
    hdd = hdd * p['f1_s'][None, :] + p['f1_b'][None, :]
    hdd = jax.nn.gelu(hdd, approximate=True)
    o2 = hdd @ p['ffn2_w'].T
    o2 = o2 * p['f2_s'][None, :] + p['f2_b'][None, :]
    ffn = o2.reshape(N, H, W, C).transpose(0, 3, 1, 2)
    return y + ffn


if __name__ == "__main__":
    key = jax.random.PRNGKey(0)
    k_x, k_p = jax.random.split(key)
    x = jax.random.normal(k_x, (N, C, H, W), dtype=jnp.float32)
    params = init_params(k_p)

    out = jax.jit(repmlp_unit_forward)(x, params)
    out = jax.block_until_ready(out)

    ref = jax.jit(reference_forward)(x, params)
    ref = jax.block_until_ready(ref)

    err = float(jnp.max(jnp.abs(out - ref)))
    if not (err < 1e-2):
        raise AssertionError(f"kernel/reference mismatch, max abs err = {err}")
    print("KERNEL_OK")
</pallas_src>

<mosaic_0001>
module attributes {stable_mosaic.version = 11 : i64} {
  func.func @fused_kernel(%arg0: memref<8x256xf32, #tpu.memory_space<vmem>>, %arg1: memref<8x4xf32, #tpu.memory_space<vmem>>, %arg2: memref<2x256x256xf32, #tpu.memory_space<vmem>>, %arg3: memref<4x8xf32, #tpu.memory_space<vmem>>, %arg4: memref<4x1xf32, #tpu.memory_space<vmem>>, %arg5: memref<8x4xf32, #tpu.memory_space<vmem>>, %arg6: memref<8x1xf32, #tpu.memory_space<vmem>>, %arg7: memref<32x8xf32, #tpu.memory_space<vmem>>, %arg8: memref<32x1xf32, #tpu.memory_space<vmem>>, %arg9: memref<8x32xf32, #tpu.memory_space<vmem>>, %arg10: memref<8x1xf32, #tpu.memory_space<vmem>>, %arg11: memref<8x256xf32, #tpu.memory_space<vmem>>) attributes {dimension_semantics = [], scalar_prefetch = 0 : i64, scratch_operands = 0 : i64, tpu.core_type = #tpu.core_type<tc>} {
    %c0 = arith.constant 0 : index
    %c0_0 = arith.constant 0 : index
    %0 = vector.load %arg0[%c0, %c0_0] : memref<8x256xf32, #tpu.memory_space<vmem>>, vector<8x256xf32>
    %c0_1 = arith.constant 0 : index
    %c0_2 = arith.constant 0 : index
    %1 = vector.load %arg1[%c0_1, %c0_2] : memref<8x4xf32, #tpu.memory_space<vmem>>, vector<8x4xf32>
    %2 = vector.extract_strided_slice %1 {offsets = [0, 0], sizes = [8, 1], strides = [1, 1]} : vector<8x4xf32> to vector<8x1xf32>
    %3 = vector.extract_strided_slice %1 {offsets = [0, 1], sizes = [8, 1], strides = [1, 1]} : vector<8x4xf32> to vector<8x1xf32>
    %4 = vector.extract_strided_slice %1 {offsets = [0, 2], sizes = [8, 1], strides = [1, 1]} : vector<8x4xf32> to vector<8x1xf32>
    %5 = vector.extract_strided_slice %1 {offsets = [0, 3], sizes = [8, 1], strides = [1, 1]} : vector<8x4xf32> to vector<8x1xf32>
    %cst = arith.constant dense<0.000000e+00> : vector<8xf32>
    %6 = vector.multi_reduction <add>, %0, %cst [1] : vector<8x256xf32> to vector<8xf32>
    %7 = vector.shape_cast %6 : vector<8xf32> to vector<8x1xf32>
    %cst_3 = arith.constant 2.560000e+02 : f32
    %8 = vector.broadcast %cst_3 : f32 to vector<8x1xf32>
    %9 = arith.divf %7, %8 : vector<8x1xf32>
    %c0_4 = arith.constant 0 : index
    %c0_5 = arith.constant 0 : index
    %10 = vector.load %arg3[%c0_4, %c0_5] : memref<4x8xf32, #tpu.memory_space<vmem>>, vector<4x8xf32>
    %cst_6 = arith.constant dense<0.000000e+00> : vector<4x1xf32>
    %11 = tpu.matmul %10, %9, %cst_6 {dimension_numbers = #tpu.dot_dimension_numbers<[1], [0], [0], [1], [0, 0, 1, 1], [], []>} : vector<4x8xf32>, vector<8x1xf32>, vector<4x1xf32> -> vector<4x1xf32>
    %c0_7 = arith.constant 0 : index
    %c0_8 = arith.constant 0 : index
    %12 = vector.load %arg4[%c0_7, %c0_8] : memref<4x1xf32, #tpu.memory_space<vmem>>, vector<4x1xf32>
    %13 = arith.addf %11, %12 : vector<4x1xf32>
    %cst_9 = arith.constant 0.000000e+00 : f32
    %14 = vector.broadcast %cst_9 : f32 to vector<4x1xf32>
    %15 = arith.maximumf %13, %14 : vector<4x1xf32>
    %c0_10 = arith.constant 0 : index
    %c0_11 = arith.constant 0 : index
    %16 = vector.load %arg5[%c0_10, %c0_11] : memref<8x4xf32, #tpu.memory_space<vmem>>, vector<8x4xf32>
    %cst_12 = arith.constant dense<0.000000e+00> : vector<8x1xf32>
    %17 = tpu.matmul %16, %15, %cst_12 {dimension_numbers = #tpu.dot_dimension_numbers<[1], [0], [0], [1], [0, 0, 1, 1], [], []>} : vector<8x4xf32>, vector<4x1xf32>, vector<8x1xf32> -> vector<8x1xf32>
    %c0_13 = arith.constant 0 : index
    %c0_14 = arith.constant 0 : index
    %18 = vector.load %arg6[%c0_13, %c0_14] : memref<8x1xf32, #tpu.memory_space<vmem>>, vector<8x1xf32>
    %19 = arith.addf %17, %18 : vector<8x1xf32>
    %20 = arith.negf %19 : vector<8x1xf32>
    %21 = math.exp %20 : vector<8x1xf32>
    %cst_15 = arith.constant 1.000000e+00 : f32
    %22 = vector.broadcast %cst_15 : f32 to vector<8x1xf32>
    %23 = arith.addf %22, %21 : vector<8x1xf32>
    %24 = arith.divf %22, %23 : vector<8x1xf32>
    %25 = vector.broadcast %2 : vector<8x1xf32> to vector<8x256xf32>
    %26 = arith.mulf %0, %25 : vector<8x256xf32>
    %27 = vector.broadcast %3 : vector<8x1xf32> to vector<8x256xf32>
    %28 = arith.addf %26, %27 : vector<8x256xf32>
    %c0_16 = arith.constant 0 : index
    %c0_17 = arith.constant 0 : index
    %c0_18 = arith.constant 0 : index
    %29 = vector.load %arg2[%c0_16, %c0_17, %c0_18] : memref<2x256x256xf32, #tpu.memory_space<vmem>>, vector<1x256x256xf32>
    %30 = vector.shape_cast %29 : vector<1x256x256xf32> to vector<256x256xf32>
    %cst_19 = arith.constant dense<0.000000e+00> : vector<8x256xf32>
    %31 = tpu.matmul %28, %30, %cst_19 {dimension_numbers = #tpu.dot_dimension_numbers<[1], [0], [0], [1], [0, 0, 1, 1], [], []>} : vector<8x256xf32>, vector<256x256xf32>, vector<8x256xf32> -> vector<8x256xf32>
    %c1 = arith.constant 1 : index
    %c0_20 = arith.constant 0 : index
    %c0_21 = arith.constant 0 : index
    %32 = vector.load %arg2[%c1, %c0_20, %c0_21] : memref<2x256x256xf32, #tpu.memory_space<vmem>>, vector<1x256x256xf32>
    %33 = vector.shape_cast %32 : vector<1x256x256xf32> to vector<256x256xf32>
    %cst_22 = arith.constant dense<0.000000e+00> : vector<8x256xf32>
    %34 = tpu.matmul %28, %33, %cst_22 {dimension_numbers = #tpu.dot_dimension_numbers<[1], [0], [0], [1], [0, 0, 1, 1], [], []>} : vector<8x256xf32>, vector<256x256xf32>, vector<8x256xf32> -> vector<8x256xf32>
    %cst_23 = arith.constant 5.000000e-01 : f32
    %35 = vector.broadcast %cst_23 : f32 to vector<8x1xf32>
    %36 = arith.cmpf ogt, %5, %35 : vector<8x1xf32>
    %37 = vector.shape_cast %36 : vector<8x1xi1> to vector<8x1xi1>
    %38 = vector.broadcast %37 : vector<8x1xi1> to vector<8x256xi1>
    %39 = arith.select %38, %31, %34 : vector<8x256xi1>, vector<8x256xf32>
    %40 = vector.broadcast %4 : vector<8x1xf32> to vector<8x256xf32>
    %41 = arith.addf %39, %40 : vector<8x256xf32>
    %42 = vector.broadcast %24 : vector<8x1xf32> to vector<8x256xf32>
    %43 = arith.mulf %41, %42 : vector<8x256xf32>
    %44 = arith.addf %0, %43 : vector<8x256xf32>
    %c0_24 = arith.constant 0 : index
    %c0_25 = arith.constant 0 : index
    %45 = vector.load %arg7[%c0_24, %c0_25] : memref<32x8xf32, #tpu.memory_space<vmem>>, vector<32x8xf32>
    %cst_26 = arith.constant dense<0.000000e+00> : vector<32x256xf32>
    %46 = tpu.matmul %45, %44, %cst_26 {dimension_numbers = #tpu.dot_dimension_numbers<[1], [0], [0], [1], [0, 0, 1, 1], [], []>} : vector<32x8xf32>, vector<8x256xf32>, vector<32x256xf32> -> vector<32x256xf32>
    %c0_27 = arith.constant 0 : index
    %c0_28 = arith.constant 0 : index
    %47 = vector.load %arg8[%c0_27, %c0_28] : memref<32x1xf32, #tpu.memory_space<vmem>>, vector<32x1xf32>
    %48 = vector.broadcast %47 : vector<32x1xf32> to vector<32x256xf32>
    %49 = arith.addf %46, %48 : vector<32x256xf32>
    %50 = arith.mulf %49, %49 : vector<32x256xf32>
    %51 = arith.mulf %49, %50 : vector<32x256xf32>
    %cst_29 = arith.constant 4.471500e-02 : f32
    %52 = vector.broadcast %cst_29 : f32 to vector<32x256xf32>
    %53 = arith.mulf %52, %51 : vector<32x256xf32>
    %54 = arith.addf %49, %53 : vector<32x256xf32>
    %cst_30 = arith.constant 0.797884583 : f32
    %55 = vector.broadcast %cst_30 : f32 to vector<32x256xf32>
    %56 = arith.mulf %55, %54 : vector<32x256xf32>
    %57 = math.tanh %56 : vector<32x256xf32>
    %cst_31 = arith.constant 1.000000e+00 : f32
    %58 = vector.broadcast %cst_31 : f32 to vector<32x256xf32>
    %59 = arith.addf %58, %57 : vector<32x256xf32>
    %cst_32 = arith.constant 5.000000e-01 : f32
    %60 = vector.broadcast %cst_32 : f32 to vector<32x256xf32>
    %61 = arith.mulf %60, %59 : vector<32x256xf32>
    %62 = arith.mulf %49, %61 : vector<32x256xf32>
    %c0_33 = arith.constant 0 : index
    %c0_34 = arith.constant 0 : index
    %63 = vector.load %arg9[%c0_33, %c0_34] : memref<8x32xf32, #tpu.memory_space<vmem>>, vector<8x32xf32>
    %cst_35 = arith.constant dense<0.000000e+00> : vector<8x256xf32>
    %64 = tpu.matmul %63, %62, %cst_35 {dimension_numbers = #tpu.dot_dimension_numbers<[1], [0], [0], [1], [0, 0, 1, 1], [], []>} : vector<8x32xf32>, vector<32x256xf32>, vector<8x256xf32> -> vector<8x256xf32>
    %c0_36 = arith.constant 0 : index
    %c0_37 = arith.constant 0 : index
    %65 = vector.load %arg10[%c0_36, %c0_37] : memref<8x1xf32, #tpu.memory_space<vmem>>, vector<8x1xf32>
    %66 = vector.broadcast %65 : vector<8x1xf32> to vector<8x256xf32>
    %67 = arith.addf %64, %66 : vector<8x256xf32>
    %68 = arith.addf %44, %67 : vector<8x256xf32>
    %c0_38 = arith.constant 0 : index
    %c0_39 = arith.constant 0 : index
    %69 = vector.load %arg11[%c0_38, %c0_39] : memref<8x256xf32, #tpu.memory_space<vmem>>, vector<8x256xf32>
    tpu.vector_store %arg11[%c0_38, %c0_39], %68 {strides = array<i32>} : memref<8x256xf32, #tpu.memory_space<vmem>>, vector<8x256xf32>,
    return
  }
}

</mosaic_0001>

<bundles_post_ra>
// kernel: mul.206
= control target key start
LH: loop header
LB: loop body
LE: loop exit
PB: predicated region body
PF: predicated region fallthrough
CT: control target
= control target key end

     0   :  { %3 = vsyncpa [#allocation1], 0  ;;  %s126_s0 = inlined_call_operand.hbm [shape: f32[2], index: 0, kind: input, shape index: {}]   ;;  %s127_s1 = inlined_call_operand.hbm [shape: f32[2], index: 1, kind: input, shape index: {}]   ;;  %s128_s2 = inlined_call_operand.vmem [shape: f32[2], index: 2, kind: output, shape index: {}]  }
   0x1   :  { %4 = vsyncpa [#allocation3], 0  ;;  %s82_s9 = smov [#allocation0]   ;;  %s83_s11 = smov [#allocation2]  }
   0x2   :  { %s9_s10 = sshll.u32 %s82_s9, 4  ;;  %s17_s12 = sshll.u32 %s83_s11, 4  ;;  %s10_s10 = int_to_ptr.vmem [resolvable:$true] %s9_s10  ;;  %s18_s12 = int_to_ptr.vmem [resolvable:$true] %s17_s12 }
   0x3   :  { %s34_s15 = scalar_lea.hbm %s126_s0, 16 }
   0x4   :  { %p35_p0 = scmp.ne.s32.totalorder %s126_s0, %s34_s15  ;;  %p38_p1 = scmp.lt.u32.totalorder %s34_s15, %s126_s0 }
   0x6   :  { %p40_p2 = pnand %p38_p1, %p35_p0 }
   0x8   :  { %43 = shalt.err (!%p40_p2)
}
   0x9   :  { %s44_s20 = scalar_lea.vmem %s10_s10, 16  ;;  %s48_s21 = scalar_lea.vmem %s10_s10, 32 }
   0xa   :  { %p45_p3 = scmp.ne.s32.totalorder %s10_s10, %s44_s20  ;;  %p49_p4 = scmp.lt.s32.totalorder %s10_s10, %s10_s10 }
   0xb   :  { %p50_p5 = scmp.lt.s32.totalorder %s48_s21, %s44_s20 }
   0xd   :  { %p51_p6 = por %p50_p5, %p49_p4 }
   0xf   :  { %p52_p7 = pnand %p51_p6, %p45_p3 }
  0x11   :  { %55 = shalt.err (!%p52_p7)
}
  0x12   :  { %12 = dma.hbm_to_vmem [thread:$0]  %s126_s0, 16, %s10_s10, [#allocation1]  }
  0x13   :  { %s56_s25 = scalar_lea.hbm %s127_s1, 16 }
  0x14   :  { %p57_p8 = scmp.ne.s32.totalorder %s127_s1, %s56_s25  ;;  %p60_p9 = scmp.lt.u32.totalorder %s56_s25, %s127_s1 }
  0x16   :  { %p62_p10 = pnand %p60_p9, %p57_p8 }
  0x18   :  { %65 = shalt.err (!%p62_p10)
}
  0x19   :  { %s66_s30 = scalar_lea.vmem %s18_s12, 16  ;;  %s70_s3 = scalar_lea.vmem %s18_s12, 32 }
  0x1a   :  { %p67_p11 = scmp.ne.s32.totalorder %s18_s12, %s66_s30  ;;  %p71_p12 = scmp.lt.s32.totalorder %s18_s12, %s18_s12 }
  0x1b   :  { %p72_p13 = scmp.lt.s32.totalorder %s70_s3, %s66_s30 }
  0x1d   :  { %p73_p0 = por %p72_p13, %p71_p12 }
  0x1f   :  { %p74_p1 = pnand %p73_p0, %p67_p11 }
  0x21   :  { %77 = shalt.err (!%p74_p1)
}
  0x22   :  { %20 = dma.hbm_to_vmem [thread:$0]  %s127_s1, 16, %s18_s12, [#allocation3]  }
  0x23   :  { %78 = dma.done.wait [#allocation1], 16  }
  0x24   :  { %79 = vsyncadd [#allocation1], 4294967280 }
  0x25   :  { %80 = dma.done.wait [#allocation3], 16  }
  0x26   :  { %81 = vsyncadd [#allocation3], 4294967280  ;;  %v23_v0 = vld [vmem:[#allocation0] sm:$0x1]  ;;  %v24_v1 = vld [vmem:[#allocation2] sm:$0x1] }
  0x27   :  { %v27_v2 = vmul.f32 %v24_v1, %v23_v0 }
  0x29   :  { %29 = vst [vmem:[%s128_s2] sm:$0x1] %v27_v2 }
  0x2a   :  { %30 = vsyncpa [#allocation1], 1 }
  0x2b   :  { %31 = vsyncpa [#allocation3], 1 }

// kernel: tile.33
= control target key start
LH: loop header
LB: loop body
LE: loop exit
PB: predicated region body
PF: predicated region fallthrough
CT: control target
= control target key end

     0   :  { %s22_s0 = inlined_call_operand.vmem [shape: f32[16], index: 0, kind: input, shape index: {}]   ;;  %s23_s1 = inlined_call_operand.vmem [shape: f32[2,16], index: 1, kind: output, shape index: {}]  }
   0x1   :  { %v4_v0 = vld [vmem:[%s22_s0] ss:$0 sm:$0xff] }
   0x2   :  { %5 = vst [vmem:[%s23_s1] sm:$0x3] %v4_v0 }

// kernel: tile.2
= control target key start
LH: loop header
LB: loop body
LE: loop exit
PB: predicated region body
PF: predicated region fallthrough
CT: control target
= control target key end

     0   :  { %s130_s8 = smov 125   ;;  %s131_s9 = smov 126   ;;  %vm7_vm0 = vcmask 7168   ;;  %s221_s0 = inlined_call_operand.vmem [shape: f32[2,16], index: 0, kind: input, shape index: {}]   ;;  %s222_s1 = inlined_call_operand.vmem [shape: f32[32,1], index: 1, kind: output, shape index: {}]  }
   0x1   :  { %v4_v0 = vld [vmem:[%s221_s0] sm:$0x3]  ;;  %s129_s0 = smov 127   ;;  %s132_s10 = smov 124  }
   0x2   :  { %5 = vst [vmem:[#allocation0] sm:$0x3] %v4_v0  ;;  %s133_s11 = smov 123   ;;  %s134_s12 = smov 122  }
   0x3   :  { %s135_s13 = smov 121   ;;  %s136_s14 = smov 120  }
   0x4   :  { %s137_s17 = smov 119   ;;  %s138_s18 = smov 118  }
   0x5   :  { %s139_s19 = smov 117   ;;  %s140_s20 = smov 116  }
   0x6   :  { %s141_s21 = smov 115   ;;  %s142_s22 = smov 114  }
   0x7   :  { %s143_s23 = smov 113  }
   0x9   :  { %v9_v1 = vld [vmem:[#allocation0] sm:$0x3]  }
   0xa   :  { %v21_v2 = vld [vmem:[#allocation0] sm:$0x3]   ;;  %10 = vrot.lane.b32.xlu0 %v9_v1, %s129_s0 }
   0xb   :  { %22 = vrot.lane.b32.xlu1 %v21_v2, %s130_s8  ;;  %v15_v3 = vld [vmem:[#allocation0] sm:$0x3]  }
   0xc   :  { %v27_v4 = vld [vmem:[#allocation0] sm:$0x3]  }
   0xd   :  { %v33_v5 = vld [vmem:[#allocation0] sm:$0x3]  }
   0xe   :  { %16 = vrot.lane.b32.xlu0 %v15_v3, %s131_s9  ;;  %v39_v6 = vld [vmem:[#allocation0] sm:$0x3]  }
   0xf   :  { %28 = vrot.lane.b32.xlu1 %v27_v4, %s132_s10  ;;  %v45_v7 = vld [vmem:[#allocation0] sm:$0x3]  }
  0x10   :  { %v51_v8 = vld [vmem:[#allocation0] sm:$0x3]  }
  0x11   :  { %v57_v9 = vld [vmem:[#allocation0] sm:$0x3]  }
  0x12   :  { %34 = vrot.lane.b32.xlu0 %v33_v5, %s133_s11  ;;  %v63_v10 = vld [vmem:[#allocation0] sm:$0x3]  }
  0x13   :  { %40 = vrot.lane.b32.xlu1 %v39_v6, %s134_s12  ;;  %v6_v11 = vld [vmem:[#allocation0] sm:$0x3]  }
  0x14   :  { %8 = vst.msk [vmem:[%s222_s1] ss:$16 sm:$0x3] %vm7_vm0, %v6_v11   ;;  %v69_v12 = vld [vmem:[#allocation0] sm:$0x3]  }
  0x15   :  { %v75_v13 = vld [vmem:[#allocation0] sm:$0x3]  }
  0x16   :  { %46 = vrot.lane.b32.xlu0 %v45_v7, %s135_s13  ;;  %v81_v14 = vld [vmem:[#allocation0] sm:$0x3]  }
  0x17   :  { %52 = vrot.lane.b32.xlu1 %v51_v8, %s136_s14  ;;  %v87_v15 = vld [vmem:[#allocation0] sm:$0x3]  }
  0x18   :  { %v93_v16 = vld [vmem:[#allocation0] sm:$0x3]  }
  0x1a   :  { %58 = vrot.lane.b32.xlu0 %v57_v9, %s137_s17 }
  0x1b   :  { %64 = vrot.lane.b32.xlu1 %v63_v10, %s138_s18 }
  0x1e   :  { %70 = vrot.lane.b32.xlu0 %v69_v12, %s139_s19 }
  0x1f   :  { %76 = vrot.lane.b32.xlu1 %v75_v13, %s140_s20 }
  0x22   :  { %82 = vrot.lane.b32.xlu0 %v81_v14, %s141_s21 }
  0x23   :  { %88 = vrot.lane.b32.xlu1 %v87_v15, %s142_s22 }
  0x26   :  { %94 = vrot.lane.b32.xlu0 %v93_v16, %s143_s23 }
  0x7c   :  { %v11_v17 = vpop.permute.xlu0 %10  }
  0x7d   :  { %v23_v18 = vpop.permute.xlu1 %22   ;;  %99 = vst.msk [vmem:[%s222_s1 + $0x1] ss:$16 sm:$0x3] %vm7_vm0, %v11_v17  }
  0x7e   :  { %101 = vst.msk [vmem:[%s222_s1 + $0x3] ss:$16 sm:$0x3] %vm7_vm0, %v23_v18  }
  0x80   :  { %v17_v19 = vpop.permute.xlu0 %16  }
  0x81   :  { %v29_v20 = vpop.permute.xlu1 %28   ;;  %100 = vst.msk [vmem:[%s222_s1 + $0x2] ss:$16 sm:$0x3] %vm7_vm0, %v17_v19  }
  0x82   :  { %102 = vst.msk [vmem:[%s222_s1 + $0x4] ss:$16 sm:$0x3] %vm7_vm0, %v29_v20  }
  0x84   :  { %v35_v21 = vpop.permute.xlu0 %34  }
  0x85   :  { %v41_v22 = vpop.permute.xlu1 %40   ;;  %103 = vst.msk [vmem:[%s222_s1 + $0x5] ss:$16 sm:$0x3] %vm7_vm0, %v35_v21  }
  0x86   :  { %104 = vst.msk [vmem:[%s222_s1 + $0x6] ss:$16 sm:$0x3] %vm7_vm0, %v41_v22  }
  0x88   :  { %v47_v23 = vpop.permute.xlu0 %46  }
  0x89   :  { %v53_v24 = vpop.permute.xlu1 %52   ;;  %105 = vst.msk [vmem:[%s222_s1 + $0x7] ss:$16 sm:$0x3] %vm7_vm0, %v47_v23  }
  0x8a   :  { %106 = vst.msk [vmem:[%s222_s1 + $0x8] ss:$16 sm:$0x3] %vm7_vm0, %v53_v24  }
  0x8c   :  { %v59_v25 = vpop.permute.xlu0 %58  }
  0x8d   :  { %v65_v26 = vpop.permute.xlu1 %64   ;;  %107 = vst.msk [vmem:[%s222_s1 + $0x9] ss:$16 sm:$0x3] %vm7_vm0, %v59_v25  }
  0x8e   :  { %108 = vst.msk [vmem:[%s222_s1 + $0xa] ss:$16 sm:$0x3] %vm7_vm0, %v65_v26  }
  0x90   :  { %v71_v27 = vpop.permute.xlu0 %70  }
  0x91   :  { %v77_v28 = vpop.permute.xlu1 %76   ;;  %109 = vst.msk [vmem:[%s222_s1 + $0xb] ss:$16 sm:$0x3] %vm7_vm0, %v71_v27  }
  0x92   :  { %110 = vst.msk [vmem:[%s222_s1 + $0xc] ss:$16 sm:$0x3] %vm7_vm0, %v77_v28  }
  0x94   :  { %v83_v29 = vpop.permute.xlu0 %82  }
  0x95   :  { %v89_v30 = vpop.permute.xlu1 %88   ;;  %111 = vst.msk [vmem:[%s222_s1 + $0xd] ss:$16 sm:$0x3] %vm7_vm0, %v83_v29  }
  0x96   :  { %112 = vst.msk [vmem:[%s222_s1 + $0xe] ss:$16 sm:$0x3] %vm7_vm0, %v89_v30  }
  0x98   :  { %v95_v31 = vpop.permute.xlu0 %94  }
  0x99   :  { %113 = vst.msk [vmem:[%s222_s1 + $0xf] ss:$16 sm:$0x3] %vm7_vm0, %v95_v31  }

// kernel: tile.23
= control target key start
LH: loop header
LB: loop body
LE: loop exit
PB: predicated region body
PF: predicated region fallthrough
CT: control target
= control target key end

     0   :  { %s22_s0 = inlined_call_operand.vmem [shape: f32[2], index: 0, kind: input, shape index: {}]   ;;  %s23_s1 = inlined_call_operand.vmem [shape: f32[2,2], index: 1, kind: output, shape index: {}]  }
   0x1   :  { %v4_v0 = vld [vmem:[%s22_s0] ss:$0 sm:$0xff] }
   0x2   :  { %5 = vst [vmem:[%s23_s1] sm:$0x3] %v4_v0 }

// kernel: tile.0
= control target key start
LH: loop header
LB: loop body
LE: loop exit
PB: predicated region body
PF: predicated region fallthrough
CT: control target
= control target key end

     0   :  { %vm7_vm0 = vcmask 7168   ;;  %s39_s0 = inlined_call_operand.vmem [shape: f32[2,2], index: 0, kind: input, shape index: {}]   ;;  %s40_s1 = inlined_call_operand.vmem [shape: f32[4,1], index: 1, kind: output, shape index: {}]  }
   0x1   :  { %v4_v0 = vld [vmem:[%s39_s0] sm:$0x3]  ;;  %s22_s0 = smov 127  }
   0x2   :  { %5 = vst [vmem:[#allocation1] sm:$0x3] %v4_v0 }
   0x9   :  { %v9_v1 = vld [vmem:[#allocation1] sm:$0x3]  }
   0xa   :  { %v6_v2 = vld [vmem:[#allocation1] sm:$0x3]   ;;  %10 = vrot.lane.b32.xlu0 %v9_v1, %s22_s0 }
   0xb   :  { %8 = vst.msk [vmem:[#allocation0] ss:$2 sm:$0x3] %vm7_vm0, %v6_v2  }
  0x7c   :  { %v11_v3 = vpop.permute.xlu0 %10  }
  0x7d   :  { %14 = vst.msk [vmem:[#allocation0 + $0x1] ss:$2 sm:$0x3] %vm7_vm0, %v11_v3  }
  0x84   :  { %v18_v4 = vld [vmem:[#allocation0] sm:$0xf] }
  0x85   :  { %20 = vst [vmem:[%s40_s1] sm:$0xf] %v18_v4 }

// kernel: tile.28
= control target key start
LH: loop header
LB: loop body
LE: loop exit
PB: predicated region body
PF: predicated region fallthrough
CT: control target
= control target key end

     0   :  { %s22_s0 = inlined_call_operand.vmem [shape: f32[4], index: 0, kind: input, shape index: {}]   ;;  %s23_s1 = inlined_call_operand.vmem [shape: f32[2,4], index: 1, kind: output, shape index: {}]  }
   0x1   :  { %v4_v0 = vld [vmem:[%s22_s0] ss:$0 sm:$0xff] }
   0x2   :  { %5 = vst [vmem:[%s23_s1] sm:$0x3] %v4_v0 }

// kernel: tile.1
= control target key start
LH: loop header
LB: loop body
LE: loop exit
PB: predicated region body
PF: predicated region fallthrough
CT: control target
= control target key end

     0   :  { %s34_s8 = smov 125   ;;  %vm7_vm0 = vcmask 7168   ;;  %s35_s11 = smov 126   ;;  %s61_s0 = inlined_call_operand.vmem [shape: f32[2,4], index: 0, kind: input, shape index: {}]   ;;  %s62_s1 = inlined_call_operand.vmem [shape: f32[8,1], index: 1, kind: output, shape index: {}]  }
   0x1   :  { %v4_v0 = vld [vmem:[%s61_s0] sm:$0x3]  ;;  %s33_s0 = smov 127  }
   0x2   :  { %5 = vst [vmem:[#allocation0] sm:$0x3] %v4_v0 }
   0x9   :  { %v9_v1 = vld [vmem:[#allocation0] sm:$0x3]  }
   0xa   :  { %v21_v2 = vld [vmem:[#allocation0] sm:$0x3]   ;;  %10 = vrot.lane.b32.xlu0 %v9_v1, %s33_s0 }
   0xb   :  { %22 = vrot.lane.b32.xlu1 %v21_v2, %s34_s8  ;;  %v6_v3 = vld [vmem:[#allocation0] sm:$0x3]  }
   0xc   :  { %v15_v4 = vld [vmem:[#allocation0] sm:$0x3]   ;;  %8 = vst.msk [vmem:[%s62_s1] ss:$4 sm:$0x3] %vm7_vm0, %v6_v3  }
   0xe   :  { %16 = vrot.lane.b32.xlu0 %v15_v4, %s35_s11 }
  0x7c   :  { %v11_v5 = vpop.permute.xlu0 %10  }
  0x7d   :  { %v23_v6 = vpop.permute.xlu1 %22   ;;  %27 = vst.msk [vmem:[%s62_s1 + $0x1] ss:$4 sm:$0x3] %vm7_vm0, %v11_v5  }
  0x7e   :  { %29 = vst.msk [vmem:[%s62_s1 + $0x3] ss:$4 sm:$0x3] %vm7_vm0, %v23_v6  }
  0x80   :  { %v17_v7 = vpop.permute.xlu0 %16  }
  0x81   :  { %28 = vst.msk [vmem:[%s62_s1 + $0x2] ss:$4 sm:$0x3] %vm7_vm0, %v17_v7  }

// kernel: repmlp_unit_forward.1
= control target key start
LH: loop header
LB: loop body
LE: loop exit
PB: predicated region body
PF: predicated region fallthrough
CT: control target
= control target key end

     0   :  { %v1061_v3 = vmov 0.0   ;;  %vm1062_vm0 = vmmov 0   ;;  %vm48_vm1 = vcmask 64512   ;;  %v1063_v7 = vmov 0   ;;  %s1662_s0 = inlined_call_operand.vmem [shape: f32[8,256], index: 0, kind: input, shape index: {}]   ;;  %s1663_s3 = inlined_call_operand.vmem [shape: f32[4,8], index: 3, kind: input, shape index: {}]   ;;  %s1664_s1 = inlined_call_operand.vmem [shape: f32[8,4], index: 1, kind: input, shape index: {}]   ;;  %s1665_s2 = inlined_call_operand.vmem [shape: f32[2,256,256], index: 2, kind: input, shape index: {}]   ;;  %s1666_s4 = inlined_call_operand.vmem [shape: f32[4,1], index: 4, kind: input, shape index: {}]   ;;  %s1667_s5 = inlined_call_operand.vmem [shape: f32[8,4], index: 5, kind: input, shape index: {}]   ;;  %s1668_s6 = inlined_call_operand.vmem [shape: f32[8,1], index: 6, kind: input, shape index: {}]   ;;  %s1669_s8 = inlined_call_operand.vmem [shape: f32[32,1], index: 8, kind: input, shape index: {}]   ;;  %s1670_s10 = inlined_call_operand.vmem [shape: f32[8,1], index: 10, kind: input, shape index: {}]   ;;  %s1671_s7 = inlined_call_operand.vmem [shape: f32[32,8], index: 7, kind: input, shape index: {}]   ;;  %s1672_s9 = inlined_call_operand.vmem [shape: f32[8,32], index: 9, kind: input, shape index: {}]   ;;  %s1673_s11 = inlined_call_operand.vmem [shape: f32[8,256], index: 11, kind: output, shape index: {}]  }
   0x1   :  { %v1130_v0 = vld [vmem:[%s1662_s0] sm:$0xff]  ;;  %v1135_v1 = vld [vmem:[%s1662_s0 + $0x8] sm:$0xff]  ;;  %884 = vmatprep.subr.mxu1 %v1061_v3  ;;  %886 = vmatprep.mubr.msk.f32.mxu1 %vm1062_vm0, %v1061_v3  ;;  %v1064_v9 = vmov 1   ;;  %v225_v11 = vld [vmem:[%s1665_s2 + $0x18] sm:$0xff]  ;;  %vm129_vm2 = vcmask 1043456   ;;  %vm125_vm3 = vcmask 31744  }
   0x2   :  { %v41_v2 = vadd.f32 %v1135_v1, %v1130_v0  ;;  %v46_v6 = vld [vmem:[%s1663_s3] sm:$0xf]  ;;  %1036 = vset.pattern.permute.xlu0 %v1063_v7  ;;  %1037 = vset.pattern.permute.xlu1 %v1064_v9  ;;  %v223_v10 = vld [vmem:[%s1665_s2 + $0x8] sm:$0xff]  ;;  %v224_v14 = vld [vmem:[%s1665_s2 + $0x10] sm:$0xff]  ;;  %vm724_vm6 = vcmask 261120  }
   0x3   :  { %v1151_v8 = vld [vmem:[%s1664_s1] sm:$0xff]  ;;  %v894_v12 = vpack.c.bf16 %v225_v11, %v223_v10  ;;  %v227_v16 = vld [vmem:[%s1665_s2 + $0x28] sm:$0xff]  ;;  %v229_v17 = vld [vmem:[%s1665_s2 + $0x38] sm:$0xff] }
   0x4   :  { %42 = vadd.xlane.f32.xlu0 %v41_v2  ;;  %217 = vperm.xlu1 %1037, %v1151_v8   ;;  %v222_v13 = vld [vmem:[%s1665_s2] sm:$0xff]  ;;  %v898_v18 = vpack.c.bf16 %v229_v17, %v227_v16  ;;  %v228_v20 = vld [vmem:[%s1665_s2 + $0x30] sm:$0xff]  ;;  %v231_v22 = vld [vmem:[%s1665_s2 + $0x48] sm:$0xff]  ;;  %vm493_vm4 = vcmp.gt.f32.partialorder %v1151_v8, 0.5 }
   0x5   :  { %895 = vmatprep.subr.bf16.mxu0 %v894_v12  ;;  %v896_v15 = vpack.c.bf16 %v224_v14, %v222_v13  ;;  %v226_v19 = vld [vmem:[%s1665_s2 + $0x20] sm:$0xff]  ;;  %v233_v23 = vld [vmem:[%s1665_s2 + $0x58] sm:$0xff]  ;;  %v232_v26 = vld [vmem:[%s1665_s2 + $0x50] sm:$0xff] }
   0x6   :  { %v900_v21 = vpack.c.bf16 %v228_v20, %v226_v19  ;;  %v902_v24 = vpack.c.bf16 %v233_v23, %v231_v22  ;;  %v230_v25 = vld [vmem:[%s1665_s2 + $0x40] sm:$0xff]  ;;  %v235_v27 = vld [vmem:[%s1665_s2 + $0x68] sm:$0xff]  ;;  %v237_v28 = vld [vmem:[%s1665_s2 + $0x78] sm:$0xff] }
   0x7   :  { %897 = vmatpush1.bf16.msra.mxu0 %v896_v15  ;;  %v904_v29 = vpack.c.bf16 %v232_v26, %v230_v25  ;;  %v906_v30 = vpack.c.bf16 %v237_v28, %v235_v27  ;;  %v234_v31 = vld [vmem:[%s1665_s2 + $0x60] sm:$0xff]  ;;  %v236_v32 = vld [vmem:[%s1665_s2 + $0x70] sm:$0xff]  ;;  %v239_v33 = vld [vmem:[%s1665_s2 + $0x88] sm:$0xff] }
   0x8   :  { %899 = vmatprep.subr.bf16.mxu0 %v898_v18  ;;  %v241_v34 = vld [vmem:[%s1665_s2 + $0x98] sm:$0xff]  ;;  %v908_v35 = vpack.c.bf16 %v236_v32, %v234_v31  ;;  %v238_v37 = vld [vmem:[%s1665_s2 + $0x80] sm:$0xff]  ;;  %v240_v38 = vld [vmem:[%s1665_s2 + $0x90] sm:$0xff] }
   0x9   :  { %v910_v36 = vpack.c.bf16 %v241_v34, %v239_v33  ;;  %v243_v39 = vld [vmem:[%s1665_s2 + $0xa8] sm:$0xff]  ;;  %v245_v40 = vld [vmem:[%s1665_s2 + $0xb8] sm:$0xff]  ;;  %v912_v41 = vpack.c.bf16 %v240_v38, %v238_v37  ;;  %v242_v43 = vld [vmem:[%s1665_s2 + $0xa0] sm:$0xff] }
   0xa   :  { %v914_v42 = vpack.c.bf16 %v245_v40, %v243_v39  ;;  %v244_v44 = vld [vmem:[%s1665_s2 + $0xb0] sm:$0xff]  ;;  %v247_v45 = vld [vmem:[%s1665_s2 + $0xc8] sm:$0xff]  ;;  %v249_v46 = vld [vmem:[%s1665_s2 + $0xd8] sm:$0xff] }
   0xb   :  { %901 = vmatpush1.bf16.msra.mxu0 %v900_v21  ;;  %v916_v47 = vpack.c.bf16 %v244_v44, %v242_v43  ;;  %v918_v48 = vpack.c.bf16 %v249_v46, %v247_v45  ;;  %v246_v49 = vld [vmem:[%s1665_s2 + $0xc0] sm:$0xff]  ;;  %v248_v50 = vld [vmem:[%s1665_s2 + $0xd0] sm:$0xff]  ;;  %v251_v51 = vld [vmem:[%s1665_s2 + $0xe8] sm:$0xff] }
   0xc   :  { %903 = vmatprep.subr.bf16.mxu0 %v902_v24  ;;  %v253_v52 = vld [vmem:[%s1665_s2 + $0xf8] sm:$0xff]  ;;  %v920_v53 = vpack.c.bf16 %v248_v50, %v246_v49  ;;  %v250_v55 = vld [vmem:[%s1665_s2 + $0xe0] sm:$0xff]  ;;  %v252_v56 = vld [vmem:[%s1665_s2 + $0xf0] sm:$0xff] }
   0xd   :  { %v922_v54 = vpack.c.bf16 %v253_v52, %v251_v51  ;;  %v255_v57 = vld [vmem:[%s1665_s2 + $0x108] sm:$0xff]  ;;  %v257_v58 = vld [vmem:[%s1665_s2 + $0x118] sm:$0xff]  ;;  %v924_v59 = vpack.c.bf16 %v252_v56, %v250_v55  ;;  %v254_v61 = vld [vmem:[%s1665_s2 + $0x100] sm:$0xff] }
   0xe   :  { %v926_v60 = vpack.c.bf16 %v257_v58, %v255_v57  ;;  %v256_v62 = vld [vmem:[%s1665_s2 + $0x110] sm:$0xff]  ;;  %v259_v63 = vld [vmem:[%s1665_s2 + $0x128] sm:$0xff]  ;;  %v261_v2 = vld [vmem:[%s1665_s2 + $0x138] sm:$0xff] }
   0xf   :  { %905 = vmatpush1.bf16.msra.mxu0 %v904_v29  ;;  %v260_v9 = vld [vmem:[%s1665_s2 + $0x130] sm:$0xff]  ;;  %v263_v10 = vld [vmem:[%s1665_s2 + $0x148] sm:$0xff]  ;;  %v265_v11 = vld [vmem:[%s1665_s2 + $0x158] sm:$0xff] }
  0x10   :  { %907 = vmatprep.subr.bf16.mxu0 %v906_v30  ;;  %v934_v13 = vpack.c.bf16 %v265_v11, %v263_v10  ;;  %v262_v14 = vld [vmem:[%s1665_s2 + $0x140] sm:$0xff]  ;;  %v264_v15 = vld [vmem:[%s1665_s2 + $0x150] sm:$0xff]  ;;  %v267_v16 = vld [vmem:[%s1665_s2 + $0x168] sm:$0xff] }
  0x11   :  { %v269_v17 = vld [vmem:[%s1665_s2 + $0x178] sm:$0xff]  ;;  %v936_v18 = vpack.c.bf16 %v264_v15, %v262_v14  ;;  %v266_v20 = vld [vmem:[%s1665_s2 + $0x160] sm:$0xff]  ;;  %v268_v21 = vld [vmem:[%s1665_s2 + $0x170] sm:$0xff] }
  0x12   :  { %v938_v19 = vpack.c.bf16 %v269_v17, %v267_v16  ;;  %v271_v22 = vld [vmem:[%s1665_s2 + $0x188] sm:$0xff]  ;;  %v273_v23 = vld [vmem:[%s1665_s2 + $0x198] sm:$0xff]  ;;  %v940_v24 = vpack.c.bf16 %v268_v21, %v266_v20  ;;  %v270_v26 = vld [vmem:[%s1665_s2 + $0x180] sm:$0xff] }
  0x13   :  { %909 = vmatpush1.bf16.msra.mxu0 %v908_v35  ;;  %v942_v25 = vpack.c.bf16 %v273_v23, %v271_v22  ;;  %v272_v27 = vld [vmem:[%s1665_s2 + $0x190] sm:$0xff]  ;;  %v275_v28 = vld [vmem:[%s1665_s2 + $0x1a8] sm:$0xff]  ;;  %v277_v29 = vld [vmem:[%s1665_s2 + $0x1b8] sm:$0xff] }
  0x14   :  { %911 = vmatprep.subr.bf16.mxu0 %v910_v36  ;;  %v944_v30 = vpack.c.bf16 %v272_v27, %v270_v26  ;;  %v946_v31 = vpack.c.bf16 %v277_v29, %v275_v28  ;;  %v274_v32 = vld [vmem:[%s1665_s2 + $0x1a0] sm:$0xff]  ;;  %v276_v33 = vld [vmem:[%s1665_s2 + $0x1b0] sm:$0xff]  ;;  %v279_v34 = vld [vmem:[%s1665_s2 + $0x1c8] sm:$0xff] }
  0x15   :  { %v281_v35 = vld [vmem:[%s1665_s2 + $0x1d8] sm:$0xff]  ;;  %v948_v36 = vpack.c.bf16 %v276_v33, %v274_v32  ;;  %v278_v38 = vld [vmem:[%s1665_s2 + $0x1c0] sm:$0xff]  ;;  %v280_v39 = vld [vmem:[%s1665_s2 + $0x1d0] sm:$0xff] }
  0x16   :  { %v950_v37 = vpack.c.bf16 %v281_v35, %v279_v34  ;;  %v283_v40 = vld [vmem:[%s1665_s2 + $0x1e8] sm:$0xff]  ;;  %v282_v44 = vld [vmem:[%s1665_s2 + $0x1e0] sm:$0xff]  ;;  %v284_v45 = vld [vmem:[%s1665_s2 + $0x1f0] sm:$0xff] }
  0x17   :  { %913 = vmatpush1.bf16.msra.mxu0 %v912_v41  ;;  %v285_v41 = vld [vmem:[%s1665_s2 + $0x1f8] sm:$0xff]  ;;  %v956_v46 = vpack.c.bf16 %v284_v45, %v282_v44  ;;  %v811_v51 = vld [vmem:[%s1665_s2 + $0x200] sm:$0xff]  ;;  %v813_v52 = vld [vmem:[%s1665_s2 + $0x210] sm:$0xff] }
  0x18   :  { %915 = vmatprep.subr.bf16.mxu0 %v914_v42  ;;  %v952_v42 = vpack.c.bf16 %v280_v39, %v278_v38  ;;  %v954_v43 = vpack.c.bf16 %v285_v41, %v283_v40  ;;  %v814_v49 = vld [vmem:[%s1665_s2 + $0x218] sm:$0xff]  ;;  %v816_v55 = vld [vmem:[%s1665_s2 + $0x228] sm:$0xff]  ;;  %v819_v11 = vld [vmem:[%s1665_s2 + $0x240] sm:$0xff] }
  0x19   :  { %v818_v56 = vld [vmem:[%s1665_s2 + $0x238] sm:$0xff]  ;;  %v824_v15 = vld [vmem:[%s1665_s2 + $0x268] sm:$0xff]  ;;  %v823_v21 = vld [vmem:[%s1665_s2 + $0x260] sm:$0xff] }
  0x1a   :  { %211 = vperm.xlu0 %1036, %v1151_v8   ;;  %v826_v16 = vld [vmem:[%s1665_s2 + $0x278] sm:$0xff]  ;;  %v825_v22 = vld [vmem:[%s1665_s2 + $0x270] sm:$0xff]  ;;  %v828_v23 = vld [vmem:[%s1665_s2 + $0x288] sm:$0xff] }
  0x1b   :  { %917 = vmatpush1.bf16.msra.mxu0 %v916_v47  ;;  %v47_v47 = vld [vmem:[%s1666_s4] sm:$0xf]  ;;  %v970_v20 = vpack.c.bf16 %v826_v16, %v824_v15  ;;  %v829_v28 = vld [vmem:[%s1665_s2 + $0x290] sm:$0xff]  ;;  %v832_v29 = vld [vmem:[%s1665_s2 + $0x2a8] sm:$0xff] }
  0x1c   :  { %919 = vmatprep.subr.bf16.mxu0 %v918_v48  ;;  %v812_v48 = vld [vmem:[%s1665_s2 + $0x208] sm:$0xff]  ;;  %v827_v27 = vld [vmem:[%s1665_s2 + $0x280] sm:$0xff]  ;;  %v833_v34 = vld [vmem:[%s1665_s2 + $0x2b0] sm:$0xff] }
  0x1d   :  { %v958_v57 = vpack.c.bf16 %v814_v49, %v812_v48  ;;  %v831_v33 = vld [vmem:[%s1665_s2 + $0x2a0] sm:$0xff]  ;;  %v836_v35 = vld [vmem:[%s1665_s2 + $0x2c8] sm:$0xff]  ;;  %v837_v40 = vld [vmem:[%s1665_s2 + $0x2d0] sm:$0xff] }
  0x1e   :  { %v835_v39 = vld [vmem:[%s1665_s2 + $0x2c0] sm:$0xff]  ;;  %v840_v41 = vld [vmem:[%s1665_s2 + $0x2e8] sm:$0xff]  ;;  %v846_v48 = vld [vmem:[%s1665_s2 + $0x318] sm:$0xff] }
  0x1f   :  { %921 = vmatpush1.bf16.msra.mxu0 %v920_v53  ;;  %v839_v45 = vld [vmem:[%s1665_s2 + $0x2e0] sm:$0xff] }
  0x20   :  { %923 = vmatprep.subr.bf16.mxu0 %v922_v54  ;;  %v859_v16 = vld [vmem:[%s1665_s2 + $0x380] sm:$0xff] }
  0x23   :  { %925 = vmatpush1.bf16.msra.mxu0 %v924_v59  ;;  %v123_v59 = vld [vmem:[%s1667_s5] sm:$0xff] }
  0x24   :  { %927 = vmatprep.subr.bf16.mxu0 %v926_v60  ;;  %v960_v60 = vpack.c.bf16 %v813_v52, %v811_v51  ;;  %v843_v51 = vld [vmem:[%s1665_s2 + $0x300] sm:$0xff]  ;;  %v845_v52 = vld [vmem:[%s1665_s2 + $0x310] sm:$0xff] }
  0x91   :  { %v43_v4 = vpop.xlane.xlu0 %42 }
  0x92   :  { %v45_v5 = vmul.f32 0.00390625, %v43_v4  ;;  %v928_v4 = vpack.c.bf16 %v256_v62, %v254_v61  ;;  %v962_v61 = vpack.c.bf16 %v818_v56, %v816_v55  ;;  %v815_v62 = vld [vmem:[%s1665_s2 + $0x220] sm:$0xff]  ;;  %v992_v55 = vpack.c.bf16 %v845_v52, %v843_v51  ;;  %v523_v51 = vld [vmem:[%s1669_s8 + $0x18] sm:$0xff] }
  0x93   :  { %v718_v52 = vld [vmem:[%s1670_s10] sm:$0xff] }
  0x94   :  { %885 = vmatpush3.msra.mxu1 %v45_v5  ;;  %v930_v5 = vpack.c.bf16 %v261_v2, %v259_v63  ;;  %929 = vmatpush1.bf16.msra.mxu0 %v928_v4  ;;  %v817_v63 = vld [vmem:[%s1665_s2 + $0x230] sm:$0xff]  ;;  %v820_v2 = vld [vmem:[%s1665_s2 + $0x248] sm:$0xff]  ;;  %v822_v4 = vld [vmem:[%s1665_s2 + $0x258] sm:$0xff] }
  0x95   :  { %887 = vmatmul.mubr.msk.f32.vlgmr.msra.gmra.mrb[0].mxu1 %vm48_vm1, %v46_v6  ;;  %889 = vmatprep.subr.mxu1 %v1061_v3  ;;  %v258_v6 = vld [vmem:[%s1665_s2 + $0x120] sm:$0xff]  ;;  %v966_v10 = vpack.c.bf16 %v822_v4, %v820_v2  ;;  %v853_v2 = vld [vmem:[%s1665_s2 + $0x350] sm:$0xff]  ;;  %v856_v4 = vld [vmem:[%s1665_s2 + $0x368] sm:$0xff] }
  0x96   :  { %891 = vmatprep.mubr.msk.f32.mxu1 %vm1062_vm0, %v1061_v3  ;;  %v932_v12 = vpack.c.bf16 %v260_v9, %v258_v6  ;;  %931 = vmatprep.subr.bf16.mxu0 %v930_v5  ;;  %v964_v5 = vpack.c.bf16 %v817_v63, %v815_v62  ;;  %v218_v9 = vpop.permute.xlu1 %217  ;;  %v851_v63 = vld [vmem:[%s1665_s2 + $0x340] sm:$0xff] }
  0x98   :  { %933 = vmatpush1.bf16.msra.mxu0 %v932_v12  ;;  %v821_v12 = vld [vmem:[%s1665_s2 + $0x250] sm:$0xff] }
  0x99   :  { %935 = vmatprep.subr.bf16.mxu0 %v934_v13  ;;  %v212_v6 = vpop.permute.xlu0 %211 }
  0x9a   :  { %v214_v13 = vmul.f32 %v212_v6, %v1130_v0  ;;  %v215_v14 = vmul.f32 %v212_v6, %v1135_v1  ;;  %v1000_v6 = vpack.c.bf16 %v853_v2, %v851_v63 }
  0x9c   :  { %937 = vmatpush1.bf16.msra.mxu0 %v936_v18  ;;  %v1397_v17 = vadd.f32 %v218_v9, %v214_v13  ;;  %v221_v18 = vadd.f32 %v218_v9, %v215_v14  ;;  %v862_v13 = vld [vmem:[%s1665_s2 + $0x398] sm:$0xff] }
  0x9d   :  { %939 = vmatprep.subr.bf16.mxu0 %v938_v19  ;;  %v968_v19 = vpack.c.bf16 %v821_v12, %v819_v11  ;;  %v857_v11 = vld [vmem:[%s1665_s2 + $0x370] sm:$0xff]  ;;  %v860_v12 = vld [vmem:[%s1665_s2 + $0x388] sm:$0xff] }
  0x9e   :  { %350 = vmatprep.mubr.f32.mxu0 %v221_v18  ;;  %v1006_v15 = vpack.c.bf16 %v862_v13, %v860_v12 }
  0xa0   :  { %941 = vmatpush1.bf16.msra.mxu0 %v940_v24  ;;  %v830_v24 = vld [vmem:[%s1665_s2 + $0x298] sm:$0xff] }
  0xa1   :  { %943 = vmatprep.subr.bf16.mxu0 %v942_v25  ;;  %v972_v25 = vpack.c.bf16 %v825_v22, %v823_v21  ;;  %v974_v26 = vpack.c.bf16 %v830_v24, %v828_v23  ;;  %v863_v23 = vld [vmem:[%s1665_s2 + $0x3a0] sm:$0xff]  ;;  %v865_v24 = vld [vmem:[%s1665_s2 + $0x3b0] sm:$0xff] }
  0xa4   :  { %945 = vmatpush1.bf16.msra.mxu0 %v944_v30  ;;  %v834_v30 = vld [vmem:[%s1665_s2 + $0x2b8] sm:$0xff] }
  0xa5   :  { %947 = vmatprep.subr.bf16.mxu0 %v946_v31  ;;  %v976_v31 = vpack.c.bf16 %v829_v28, %v827_v27  ;;  %v978_v32 = vpack.c.bf16 %v834_v30, %v832_v29  ;;  %v1012_v27 = vpack.c.bf16 %v865_v24, %v863_v23  ;;  %v867_v29 = vld [vmem:[%s1665_s2 + $0x3c0] sm:$0xff]  ;;  %v869_v30 = vld [vmem:[%s1665_s2 + $0x3d0] sm:$0xff] }
  0xa8   :  { %949 = vmatpush1.bf16.msra.mxu0 %v948_v36  ;;  %v838_v36 = vld [vmem:[%s1665_s2 + $0x2d8] sm:$0xff] }
  0xa9   :  { %951 = vmatprep.subr.bf16.mxu0 %v950_v37  ;;  %v980_v37 = vpack.c.bf16 %v833_v34, %v831_v33  ;;  %v982_v38 = vpack.c.bf16 %v838_v36, %v836_v35  ;;  %v1016_v33 = vpack.c.bf16 %v869_v30, %v867_v29  ;;  %v871_v35 = vld [vmem:[%s1665_s2 + $0x3e0] sm:$0xff]  ;;  %v873_v36 = vld [vmem:[%s1665_s2 + $0x3f0] sm:$0xff] }
  0xac   :  { %953 = vmatpush1.bf16.msra.mxu0 %v952_v42  ;;  %v842_v42 = vld [vmem:[%s1665_s2 + $0x2f8] sm:$0xff] }
  0xad   :  { %955 = vmatprep.subr.bf16.mxu0 %v954_v43  ;;  %v984_v43 = vpack.c.bf16 %v837_v40, %v835_v39  ;;  %v986_v44 = vpack.c.bf16 %v842_v42, %v840_v41  ;;  %v494_v39 = vsel %vm493_vm4, 1, %v1063_v7  ;;  %v1066_v40 = vmov 2   ;;  %v124_v41 = vld [vmem:[%s1668_s6] sm:$0xff] }
  0xb0   :  { %957 = vmatpush1.bf16.msra.mxu0 %v956_v46  ;;  %v841_v46 = vld [vmem:[%s1665_s2 + $0x2f0] sm:$0xff] }
  0xb1   :  { %v988_v49 = vpack.c.bf16 %v841_v46, %v839_v45 }
  0xb3   :  { %351 = vmatmul.mubr.f32.vlgmr.msra.gmra.mrb[0].mxu0 %v1397_v17 }
  0xb4   :  { %620 = vmatprep.mubr.f32.mxu0 %v1061_v3 }
 0x168   :  { %v118_v50 = vpop.f32.mrb[0].mxu1 }
 0x169   :  { %v119_v53 = vadd.f32 %v118_v50, %v47_v47  ;;  %v888_v54 = vpop.f32.mrb[1].mxu1  ;;  %v844_v47 = vld [vmem:[%s1665_s2 + $0x308] sm:$0xff] }
 0x16a   :  { %v990_v50 = vpack.c.bf16 %v846_v48, %v844_v47  ;;  %v850_v54 = vld [vmem:[%s1665_s2 + $0x338] sm:$0xff] }
 0x16b   :  { %v122_v58 = vmax.f32 %v119_v53, 0.0  ;;  %v848_v53 = vld [vmem:[%s1665_s2 + $0x328] sm:$0xff] }
 0x16c   :  { %v994_v56 = vpack.c.bf16 %v850_v54, %v848_v53 }
 0x16d   :  { %890 = vmatpush3.msk.msra.mxu1 %vm129_vm2, %v122_v58  ;;  %v849_v58 = vld [vmem:[%s1665_s2 + $0x330] sm:$0xff] }
 0x16e   :  { %892 = vmatmul.mubr.msk.f32.vlgmr.msra.gmra.mrb[2].mxu1 %vm125_vm3, %v123_v59  ;;  %959 = vmatprep.subr.bf16.mxu1 %v958_v57  ;;  %v847_v57 = vld [vmem:[%s1665_s2 + $0x320] sm:$0xff]  ;;  %v852_v59 = vld [vmem:[%s1665_s2 + $0x348] sm:$0xff] }
 0x16f   :  { %961 = vmatpush1.bf16.msra.mxu1 %v960_v60  ;;  %486 = vmatprep.mubr.f32.mxu1 %v221_v18  ;;  %v854_v60 = vld [vmem:[%s1665_s2 + $0x358] sm:$0xff]  ;;  %v861_v18 = vld [vmem:[%s1665_s2 + $0x390] sm:$0xff] }
 0x170   :  { %963 = vmatprep.subr.bf16.mxu1 %v962_v61  ;;  %v996_v61 = vpack.c.bf16 %v849_v58, %v847_v57  ;;  %v998_v62 = vpack.c.bf16 %v854_v60, %v852_v59  ;;  %v1008_v21 = vpack.c.bf16 %v861_v18, %v859_v16 }
 0x173   :  { %965 = vmatpush1.bf16.msra.mxu1 %v964_v5  ;;  %v858_v5 = vld [vmem:[%s1665_s2 + $0x378] sm:$0xff] }
 0x174   :  { %967 = vmatprep.subr.bf16.mxu1 %v966_v10  ;;  %v1002_v9 = vpack.c.bf16 %v858_v5, %v856_v4  ;;  %v855_v10 = vld [vmem:[%s1665_s2 + $0x360] sm:$0xff] }
 0x175   :  { %v1004_v14 = vpack.c.bf16 %v857_v11, %v855_v10  ;;  %v516_v5 = vld [vmem:[%s1671_s7] sm:$0xff] }
 0x177   :  { %969 = vmatpush1.bf16.msra.mxu1 %v968_v19  ;;  %v864_v19 = vld [vmem:[%s1665_s2 + $0x3a8] sm:$0xff] }
 0x178   :  { %971 = vmatprep.subr.bf16.mxu1 %v970_v20  ;;  %v866_v20 = vld [vmem:[%s1665_s2 + $0x3b8] sm:$0xff] }
 0x179   :  { %v1010_v22 = vpack.c.bf16 %v866_v20, %v864_v19 }
 0x17b   :  { %973 = vmatpush1.bf16.msra.mxu1 %v972_v25  ;;  %v868_v25 = vld [vmem:[%s1665_s2 + $0x3c8] sm:$0xff] }
 0x17c   :  { %975 = vmatprep.subr.bf16.mxu1 %v974_v26  ;;  %v870_v26 = vld [vmem:[%s1665_s2 + $0x3d8] sm:$0xff] }
 0x17d   :  { %v1014_v28 = vpack.c.bf16 %v870_v26, %v868_v25 }
 0x17f   :  { %977 = vmatpush1.bf16.msra.mxu1 %v976_v31  ;;  %v872_v31 = vld [vmem:[%s1665_s2 + $0x3e8] sm:$0xff] }
 0x180   :  { %979 = vmatprep.subr.bf16.mxu1 %v978_v32  ;;  %v874_v32 = vld [vmem:[%s1665_s2 + $0x3f8] sm:$0xff] }
 0x181   :  { %v1018_v34 = vpack.c.bf16 %v874_v32, %v872_v31 }
 0x183   :  { %981 = vmatpush1.bf16.msra.mxu1 %v980_v37  ;;  %v1020_v37 = vpack.c.bf16 %v873_v36, %v871_v35 }
 0x184   :  { %983 = vmatprep.subr.bf16.mxu1 %v982_v38  ;;  %v1065_v38 = vmov 3  }
 0x185   :  { %1038 = vset.pattern.permute.xlu1 %v1065_v38 }
 0x186   :  { %496 = vperm.xlu1 %1038, %v494_v39   ;;  %v352_v45 = vpop.f32.mrb[0].mxu0 }
 0x187   :  { %985 = vmatpush1.bf16.msra.mxu1 %v984_v43  ;;  %v354_v46 = vpop.f32.mrb[1].mxu0 }
 0x188   :  { %987 = vmatprep.subr.bf16.mxu1 %v986_v44 }
 0x18a   :  { %1039 = vset.pattern.permute.xlu1 %v1066_v40 }
 0x18b   :  { %989 = vmatpush1.bf16.msra.mxu1 %v988_v49  ;;  %502 = vperm.xlu1 %1039, %v1151_v8   ;;  %v521_v8 = vld [vmem:[%s1669_s8 + $0x8] sm:$0xff] }
 0x18c   :  { %991 = vmatprep.subr.bf16.mxu1 %v990_v50  ;;  %v522_v50 = vld [vmem:[%s1669_s8 + $0x10] sm:$0xff] }
 0x18f   :  { %993 = vmatpush1.bf16.msra.mxu1 %v992_v55  ;;  %1040 = vset.pattern.permute.xlu1 %v1063_v7  ;;  %v520_v7 = vld [vmem:[%s1669_s8] sm:$0xff] }
 0x190   :  { %995 = vmatprep.subr.bf16.mxu1 %v994_v56 }
 0x193   :  { %997 = vmatpush1.bf16.msra.mxu1 %v996_v61 }
 0x194   :  { %999 = vmatprep.subr.bf16.mxu1 %v998_v62 }
 0x197   :  { %1001 = vmatpush1.bf16.msra.mxu1 %v1000_v6  ;;  %v519_v6 = vld [vmem:[%s1671_s7 + $0x18] sm:$0xff] }
 0x198   :  { %1003 = vmatprep.subr.bf16.mxu1 %v1002_v9 }
 0x19b   :  { %1005 = vmatpush1.bf16.msra.mxu1 %v1004_v14 }
 0x19c   :  { %1007 = vmatprep.subr.bf16.mxu1 %v1006_v15 }
 0x19f   :  { %1009 = vmatpush1.bf16.msra.mxu1 %v1008_v21 }
 0x1a0   :  { %1011 = vmatprep.subr.bf16.mxu1 %v1010_v22 }
 0x1a3   :  { %1013 = vmatpush1.bf16.msra.mxu1 %v1012_v27 }
 0x1a4   :  { %1015 = vmatprep.subr.bf16.mxu1 %v1014_v28 }
 0x1a7   :  { %1017 = vmatpush1.bf16.msra.mxu1 %v1016_v33 }
 0x1a8   :  { %1019 = vmatprep.subr.bf16.mxu1 %v1018_v34 }
 0x1ab   :  { %1021 = vmatpush1.bf16.msra.mxu1 %v1020_v37 }
 0x1ae   :  { %487 = vmatmul.mubr.f32.vlgmr.msra.gmra.mrb[4].mxu1 %v1397_v17 }
 0x1af   :  { %792 = vmatprep.mubr.f32.mxu1 %v1061_v3 }
 0x205   :  { %v497_v53 = vpop.permute.xlu1 %496 }
 0x206   :  { %vm498_vm5 = vcmp.eq.s32.totalorder %v497_v53, 1 }
 0x20a   :  { %v503_v58 = vpop.permute.xlu1 %502 }
 0x241   :  { %v199_v17 = vpop.f32.mrb[2].mxu1 }
 0x242   :  { %v200_v42 = vadd.f32 %v199_v17, %v124_v41  ;;  %v893_v43 = vpop.f32.mrb[3].mxu1 }
 0x244   :  { %v810_v44 = vmul.f32 -1.442695, %v200_v42 }
 0x246   :  { %1041 = vpow2.f32 %v810_v44 }
 0x250   :  { %v1042_v47 = vpop.eup %1041 }
 0x251   :  { %v206_v48 = vadd.f32 1.0, %v1042_v47 }
 0x253   :  { %1043 = vrcp.f32 %v206_v48 }
 0x25d   :  { %v1044_v49 = vpop.eup %1043 }
 0x25e   :  { %509 = vperm.xlu1 %1040, %v1044_v49  }
 0x262   :  { %526 = vperm.xlu1 %1040, %v520_v7  }
 0x266   :  { %531 = vperm.xlu1 %1040, %v521_v8  }
 0x26a   :  { %536 = vperm.xlu1 %1040, %v522_v50  }
 0x26e   :  { %541 = vperm.xlu1 %1040, %v523_v51  }
 0x272   :  { %721 = vperm.xlu1 %1040, %v718_v52  }
 0x281   :  { %v488_v54 = vpop.f32.mrb[4].mxu1 }
 0x282   :  { %v499_v55 = vsel %vm498_vm5, %v352_v45, %v488_v54  ;;  %v490_v56 = vpop.f32.mrb[5].mxu1 }
 0x283   :  { %v500_v57 = vsel %vm498_vm5, %v354_v46, %v490_v56  ;;  %v505_v59 = vadd.f32 %v503_v58, %v499_v55 }
 0x284   :  { %v506_v60 = vadd.f32 %v503_v58, %v500_v57 }
 0x2dd   :  { %v510_v61 = vpop.permute.xlu1 %509 }
 0x2de   :  { %v512_v62 = vmul.f32 %v510_v61, %v505_v59  ;;  %v513_v63 = vmul.f32 %v510_v61, %v506_v60 }
 0x2e0   :  { %v1576_v2 = vadd.f32 %v512_v62, %v1130_v0  ;;  %v1579_v4 = vadd.f32 %v513_v63, %v1135_v1  ;;  %v517_v0 = vld [vmem:[%s1671_s7 + $0x8] sm:$0xff]  ;;  %v518_v1 = vld [vmem:[%s1671_s7 + $0x10] sm:$0xff] }
 0x2e1   :  { %v527_v9 = vpop.permute.xlu1 %526 }
 0x2e2   :  { %556 = vmatprep.subr.mxu0 %v1579_v4 }
 0x2e3   :  { %557 = vmatpush1.msra.mxu0 %v1576_v2 }
 0x2e4   :  { %875 = vmatmul.mubr.msk.f32.vlgmr.msra.gmra.mrb[2].mxu0 %vm48_vm1, %v516_v5 }
 0x2e5   :  { %626 = vmatprep.mubr.f32.mxu0 %v1061_v3  ;;  %v532_v10 = vpop.permute.xlu1 %531 }
 0x2e8   :  { %876 = vmatmul.mubr.msk.f32.gmra.mrb[4].mxu0 %vm48_vm1, %v517_v0 }
 0x2e9   :  { %632 = vmatprep.mubr.f32.mxu0 %v1061_v3  ;;  %v537_v21 = vpop.permute.xlu1 %536 }
 0x2ec   :  { %877 = vmatmul.mubr.msk.f32.gmra.mrb[6].mxu0 %vm48_vm1, %v518_v1 }
 0x2ed   :  { %638 = vmatprep.mubr.f32.mxu0 %v1061_v3  ;;  %v542_v39 = vpop.permute.xlu1 %541 }
 0x2f0   :  { %878 = vmatmul.mubr.msk.f32.gmra.mrb[8].mxu0 %vm48_vm1, %v519_v6 }
 0x3b7   :  { %v622_v11 = vpop.f32.mrb[2].mxu0 }
 0x3b8   :  { %v1602_v12 = vadd.f32 %v622_v11, %v527_v9  ;;  %v624_v13 = vpop.f32.mrb[3].mxu0 }
 0x3b9   :  { %v1604_v14 = vadd.f32 %v624_v13, %v527_v9 }
 0x3ba   :  { %v645_v15 = vmul.f32 %v1602_v12, %v1602_v12 }
 0x3bb   :  { %v646_v3 = vmul.f32 %v1604_v14, %v1604_v14  ;;  %v628_v16 = vpop.f32.mrb[4].mxu0 }
 0x3bc   :  { %v653_v18 = vmul.f32 %v645_v15, %v1602_v12  ;;  %v1611_v19 = vadd.f32 %v628_v16, %v532_v10  ;;  %v630_v20 = vpop.f32.mrb[5].mxu0 }
 0x3bd   :  { %v654_v22 = vmul.f32 %v646_v3, %v1604_v14  ;;  %v1614_v23 = vadd.f32 %v630_v20, %v532_v10 }
 0x3be   :  { %v661_v24 = vmul.f32 0.044715, %v653_v18  ;;  %v647_v25 = vmul.f32 %v1611_v19, %v1611_v19 }
 0x3bf   :  { %v662_v26 = vmul.f32 0.044715, %v654_v22  ;;  %v648_v27 = vmul.f32 %v1614_v23, %v1614_v23  ;;  %v634_v28 = vpop.f32.mrb[6].mxu0 }
 0x3c0   :  { %v669_v29 = vadd.f32 %v661_v24, %v1602_v12  ;;  %v655_v30 = vmul.f32 %v647_v25, %v1611_v19  ;;  %v1622_v31 = vadd.f32 %v634_v28, %v537_v21  ;;  %v636_v32 = vpop.f32.mrb[7].mxu0 }
 0x3c1   :  { %v670_v33 = vadd.f32 %v662_v26, %v1604_v14  ;;  %v656_v34 = vmul.f32 %v648_v27, %v1614_v23  ;;  %v1626_v35 = vadd.f32 %v636_v32, %v537_v21 }
 0x3c2   :  { %v677_v36 = vmul.f32 0.7978846, %v669_v29  ;;  %v663_v37 = vmul.f32 0.044715, %v655_v30  ;;  %v649_v38 = vmul.f32 %v1622_v31, %v1622_v31 }
 0x3c3   :  { %v678_v40 = vmul.f32 0.7978846, %v670_v33  ;;  %v664_v41 = vmul.f32 0.044715, %v656_v34  ;;  %v650_v17 = vmul.f32 %v1626_v35, %v1626_v35  ;;  %v640_v42 = vpop.f32.mrb[8].mxu0 }
 0x3c4   :  { %1045 = vtanh.f32 %v677_v36  ;;  %v671_v43 = vadd.f32 %v663_v37, %v1611_v19  ;;  %v657_v44 = vmul.f32 %v649_v38, %v1622_v31  ;;  %v1634_v45 = vadd.f32 %v640_v42, %v542_v39  ;;  %v642_v46 = vpop.f32.mrb[9].mxu0 }
 0x3c5   :  { %1047 = vtanh.f32 %v678_v40  ;;  %v672_v47 = vadd.f32 %v664_v41, %v1614_v23  ;;  %v658_v48 = vmul.f32 %v650_v17, %v1626_v35  ;;  %v643_v49 = vadd.f32 %v642_v46, %v542_v39  ;;  %v722_v46 = vpop.permute.xlu1 %721 }
 0x3c6   :  { %v679_v7 = vmul.f32 0.7978846, %v671_v43  ;;  %v665_v8 = vmul.f32 0.044715, %v657_v44  ;;  %v651_v50 = vmul.f32 %v1634_v45, %v1634_v45  ;;  %v717_v44 = vld [vmem:[%s1672_s9] sm:$0xff] }
 0x3c7   :  { %v680_v51 = vmul.f32 0.7978846, %v672_v47  ;;  %v666_v52 = vmul.f32 0.044715, %v658_v48  ;;  %v652_v53 = vmul.f32 %v643_v49, %v643_v49 }
 0x3c8   :  { %1049 = vtanh.f32 %v679_v7  ;;  %v673_v54 = vadd.f32 %v665_v8, %v1622_v31  ;;  %v659_v55 = vmul.f32 %v651_v50, %v1634_v45 }
 0x3c9   :  { %1051 = vtanh.f32 %v680_v51  ;;  %v674_v56 = vadd.f32 %v666_v52, %v1626_v35  ;;  %v660_v57 = vmul.f32 %v652_v53, %v643_v49 }
 0x3ca   :  { %v681_v58 = vmul.f32 0.7978846, %v673_v54  ;;  %v667_v59 = vmul.f32 0.044715, %v659_v55 }
 0x3cb   :  { %v682_v60 = vmul.f32 0.7978846, %v674_v56  ;;  %v668_v61 = vmul.f32 0.044715, %v660_v57 }
 0x3cc   :  { %1053 = vtanh.f32 %v681_v58  ;;  %v675_v62 = vadd.f32 %v667_v59, %v1634_v45 }
 0x3cd   :  { %1055 = vtanh.f32 %v682_v60  ;;  %v676_v63 = vadd.f32 %v668_v61, %v643_v49 }
 0x3ce   :  { %v1046_v5 = vpop.eup %1045  ;;  %v683_v0 = vmul.f32 0.7978846, %v675_v62 }
 0x3cf   :  { %v1048_v1 = vpop.eup %1047  ;;  %v693_v6 = vadd.f32 1.0, %v1046_v5  ;;  %v684_v9 = vmul.f32 0.7978846, %v676_v63 }
 0x3d0   :  { %1057 = vtanh.f32 %v683_v0  ;;  %v694_v10 = vadd.f32 1.0, %v1048_v1 }
 0x3d1   :  { %1059 = vtanh.f32 %v684_v9  ;;  %v701_v15 = vmul.f32 0.5, %v693_v6 }
 0x3d2   :  { %v1050_v11 = vpop.eup %1049  ;;  %v702_v18 = vmul.f32 0.5, %v694_v10 }
 0x3d3   :  { %v1052_v13 = vpop.eup %1051  ;;  %v695_v3 = vadd.f32 1.0, %v1050_v11  ;;  %v709_v25 = vmul.f32 %v701_v15, %v1602_v12 }
 0x3d4   :  { %v696_v16 = vadd.f32 1.0, %v1052_v13  ;;  %v710_v28 = vmul.f32 %v702_v18, %v1604_v14 }
 0x3d5   :  { %v703_v20 = vmul.f32 0.5, %v695_v3 }
 0x3d6   :  { %v1054_v21 = vpop.eup %1053  ;;  %v704_v22 = vmul.f32 0.5, %v696_v16 }
 0x3d7   :  { %v1056_v24 = vpop.eup %1055  ;;  %v711_v26 = vmul.f32 %v703_v20, %v1611_v19  ;;  %v697_v27 = vadd.f32 1.0, %v1054_v21 }
 0x3d8   :  { %v712_v29 = vmul.f32 %v704_v22, %v1614_v23  ;;  %v698_v30 = vadd.f32 1.0, %v1056_v24 }
 0x3d9   :  { %v1024_v32 = vpack.c.bf16 %v711_v26, %v709_v25  ;;  %v705_v37 = vmul.f32 0.5, %v697_v27 }
 0x3da   :  { %v1058_v33 = vpop.eup %1057  ;;  %v1022_v34 = vpack.c.bf16 %v712_v29, %v710_v28  ;;  %v706_v40 = vmul.f32 0.5, %v698_v30 }
 0x3db   :  { %v1060_v36 = vpop.eup %1059  ;;  %v699_v38 = vadd.f32 1.0, %v1058_v33  ;;  %v713_v19 = vmul.f32 %v705_v37, %v1622_v31 }
 0x3dc   :  { %1023 = vmatprep.subr.bf16.mxu1 %v1022_v34  ;;  %v700_v39 = vadd.f32 1.0, %v1060_v36  ;;  %v714_v14 = vmul.f32 %v706_v40, %v1626_v35 }
 0x3dd   :  { %v707_v41 = vmul.f32 0.5, %v699_v38  ;;  %1025 = vmatpush1.bf16.msra.mxu1 %v1024_v32 }
 0x3de   :  { %v708_v12 = vmul.f32 0.5, %v700_v39 }
 0x3df   :  { %v715_v17 = vmul.f32 %v707_v41, %v1634_v45 }
 0x3e0   :  { %v716_v23 = vmul.f32 %v708_v12, %v643_v49 }
 0x3e1   :  { %v1028_v42 = vpack.c.bf16 %v715_v17, %v713_v19 }
 0x3e2   :  { %v1026_v43 = vpack.c.bf16 %v716_v23, %v714_v14 }
 0x3e4   :  { %1027 = vmatprep.subr.bf16.mxu1 %v1026_v43 }
 0x3e5   :  { %1029 = vmatpush1.bf16.msra.mxu1 %v1028_v42 }
 0x3e8   :  { %879 = vmatmul.mubr.msk.f32.vlgmr.msra.gmra.mrb[6].mxu1 %vm724_vm6, %v717_v44 }
 0x4bb   :  { %v794_v47 = vpop.f32.mrb[6].mxu1 }
 0x4bc   :  { %v795_v48 = vadd.f32 %v794_v47, %v722_v46  ;;  %v796_v7 = vpop.f32.mrb[7].mxu1 }
 0x4bd   :  { %v797_v31 = vadd.f32 %v796_v7, %v722_v46 }
 0x4be   :  { %v799_v45 = vadd.f32 %v795_v48, %v1576_v2 }
 0x4bf   :  { %v800_v35 = vadd.f32 %v797_v31, %v1579_v4 }
 0x4c0   :  { %801 = vst [vmem:[%s1673_s11] sm:$0xff] %v799_v45 }
 0x4c1   :  { %802 = vst [vmem:[%s1673_s11 + $0x8] sm:$0xff] %v800_v35 }

</bundles_post_ra>
